<compile_context>
chip_gen: v6e
topology: v6e:2x2x1
jax: 0.10.0
libtpu: 0.0.40
codegen_flags: <defaults>
</compile_context>

<pallas_src>
import functools

import jax
import jax.numpy as jnp
from jax.experimental import pallas as pl
from jax.experimental.pallas import tpu as pltpu


def _clip_loss_kernel(scale_ref, img_ref, txt_ref, loss_ref,
                      m_r, l_r, m_c, l_c, acc, *, nbatch):
    i = pl.program_id(0)          # row-tile index (image rows)
    j = pl.program_id(1)          # col-tile index (text rows), innermost
    nrows = pl.num_programs(0)
    ncols = pl.num_programs(1)

    scale = scale_ref[0, 0]
    tcols = m_c.shape[2]

    # ---- init --------------------------------------------------------------
    @pl.when((i == 0) & (j == 0))
    def _():
        acc[...] = jnp.zeros_like(acc)

    @pl.when(j == 0)              # start of a row sweep
    def _():
        m_r[...] = jnp.full_like(m_r, -jnp.inf)
        l_r[...] = jnp.zeros_like(l_r)

    @pl.when(i == 0)              # first time this column tile is visited
    def _():
        m_c[j] = jnp.full((1, tcols), -jnp.inf, jnp.float32)
        l_c[j] = jnp.zeros((1, tcols), jnp.float32)

    # ---- logits tile --------------------------------------------------------
    img = img_ref[...]                                     # (TM, D) native dtype
    txt = txt_ref[...]                                     # (TN, D) native dtype

    # Contract over the feature dim directly — no materialized transpose.
    # Native-dtype operands keep the fast MXU path for bf16 inputs; accumulate
    # in f32.  Scale the f32 logits tile afterwards (hidden under the matmul).
    s = jax.lax.dot_general(
        img, txt,
        dimension_numbers=(((1,), (1,)), ((), ())),
        preferred_element_type=jnp.float32) * scale         # (TM, TN) f32

    # ---- online logsumexp, both directions, one tile visit ------------------
    # rows (logits_per_image):
    m_tile_r = jnp.max(s, axis=1, keepdims=True)            # (TM, 1)
    m_new_r = jnp.maximum(m_r[...], m_tile_r)
    l_r[...] = (jnp.exp(m_r[...] - m_new_r) * l_r[...]
                + jnp.sum(jnp.exp(s - m_new_r), axis=1, keepdims=True))
    m_r[...] = m_new_r

    # columns (logits_per_text == logits.T):
    m_tile_c = jnp.max(s, axis=0, keepdims=True)             # (1, TN)
    mc_old = m_c[j]
    lc_old = l_c[j]
    m_new_c = jnp.maximum(mc_old, m_tile_c)
    l_c[j] = (jnp.exp(mc_old - m_new_c) * lc_old
              + jnp.sum(jnp.exp(s - m_new_c), axis=0, keepdims=True))
    m_c[j] = m_new_c

    # ---- diagonal (target logits, labels == arange) --------------------------
    # Row range of img and row range of txt coincide exactly when i == j
    # (TM == TN), so the diagonal contribution is scale * sum(img * txt).
    @pl.when(i == j)
    def _():
        diag = jnp.sum(img.astype(jnp.float32) * txt.astype(jnp.float32),
                       keepdims=True)                        # (1, 1)
        acc[...] += (-2.0 * scale) * diag

    # ---- finalize accumulators ----------------------------------------------
    @pl.when(j == ncols - 1)       # row LSEs for this row tile are complete
    def _():
        acc[...] += jnp.sum(m_r[...] + jnp.log(l_r[...]), keepdims=True)

    @pl.when(i == nrows - 1)       # column LSEs for this column tile complete
    def _():
        acc[...] += jnp.sum(m_c[j] + jnp.log(l_c[j]), keepdims=True)

    @pl.when((i == nrows - 1) & (j == ncols - 1))
    def _():
        # loss = 0.5/N * (sum(lse_rows) + sum(lse_cols) - 2*sum(diag))
        loss_ref[...] = acc[...] * (0.5 / nbatch)


def _pick_tile(n, d, itemsize):
    # Largest MXU/lane-friendly tile that divides n and keeps the
    # double-buffered input footprint (2 arrays x 2 buffers x (t, d)) within
    # ~8 MiB — comfortably inside the default scoped-VMEM limit on
    # v5e (16 MiB) / v6e (32 MiB) / v7x (32 MiB).
    budget = 8 * 1024 * 1024
    for t in (1024, 512, 256, 128):
        if n >= t and n % t == 0 and 4 * t * d * itemsize <= budget:
            return t
    return n  # small / irregular batch: single tile (block == full array)


def clip_loss(image_features, text_features, logit_scale, *, tile=None):
    """image_features, text_features: (N, D); logit_scale: scalar. Returns f32 loss."""
    n, d = image_features.shape
    assert text_features.shape == (n, d)
    itemsize = jnp.dtype(image_features.dtype).itemsize
    t = tile if tile is not None else _pick_tile(n, d, itemsize)
    assert n % t == 0, (n, t)
    r = n // t

    scale_arr = jnp.asarray(logit_scale, jnp.float32).reshape(1, 1)
    kernel = functools.partial(_clip_loss_kernel, nbatch=n)

    cost = pl.CostEstimate(
        flops=2 * n * n * d,                 # one (N,N,D) matmul pass
        transcendentals=2 * n * n,           # row- and column-frame exps
        bytes_accessed=(1 + r) * n * d * itemsize + 4)

    out = pl.pallas_call(
        kernel,
        out_shape=jax.ShapeDtypeStruct((1, 1), jnp.float32),
        grid=(r, r),
        in_specs=[
            pl.BlockSpec(memory_space=pltpu.MemorySpace.SMEM),   # logit_scale
            pl.BlockSpec((t, d), lambda i, j: (i, 0)),           # image row tile
            pl.BlockSpec((t, d), lambda i, j: (j, 0)),           # text col tile
        ],
        out_specs=pl.BlockSpec((1, 1), lambda i, j: (0, 0)),
        scratch_shapes=[
            pltpu.VMEM((t, 1), jnp.float32),     # m_r  (row running max)
            pltpu.VMEM((t, 1), jnp.float32),     # l_r  (row running sum-exp)
            pltpu.VMEM((r, 1, t), jnp.float32),  # m_c  (col running max, all tiles)
            pltpu.VMEM((r, 1, t), jnp.float32),  # l_c  (col running sum-exp)
            pltpu.VMEM((1, 1), jnp.float32),     # acc  (scalar loss accumulator)
        ],
        compiler_params=pltpu.CompilerParams(
            dimension_semantics=("arbitrary", "arbitrary")),
        cost_estimate=cost,
    )(scale_arr, image_features, text_features)
    return out[0, 0]


def clip_loss_ref(image_features, text_features, logit_scale):
    """Pure-JAX reference matching the PyTorch module (world_size=1)."""
    logits_i = logit_scale * image_features.astype(jnp.float32) @ text_features.astype(jnp.float32).T
    logits_t = logit_scale * text_features.astype(jnp.float32) @ image_features.astype(jnp.float32).T
    labels = jnp.arange(logits_i.shape[0])

    def ce(logits):
        lse = jax.nn.logsumexp(logits, axis=1)
        tgt = logits[jnp.arange(logits.shape[0]), labels]
        return jnp.mean(lse - tgt)

    return 0.5 * (ce(logits_i) + ce(logits_t))


if __name__ == "__main__":
    def make_inputs(key, n, d, dtype=jnp.float32):
        k1, k2 = jax.random.split(key)
        img = jax.random.normal(k1, (n, d), jnp.float32)
        txt = jax.random.normal(k2, (n, d), jnp.float32)
        # L2-normalize like CLIP encoders do.
        img = img / jnp.linalg.norm(img, axis=-1, keepdims=True)
        txt = txt / jnp.linalg.norm(txt, axis=-1, keepdims=True)
        return img.astype(dtype), txt.astype(dtype)

    logit_scale = jnp.exp(jnp.float32(jnp.log(1.0 / 0.07)))  # standard CLIP init

    # Small single-tile case (batch=8, embed_dim=32).
    img, txt = make_inputs(jax.random.PRNGKey(0), 8, 32)
    loss = jax.block_until_ready(clip_loss(img, txt, logit_scale))
    ref = jax.block_until_ready(clip_loss_ref(img, txt, logit_scale))
    assert jnp.allclose(loss, ref, rtol=1e-4, atol=1e-4), (loss, ref)

    # Multi-tile case exercising the (row, col) grid + online-LSE path.
    img2, txt2 = make_inputs(jax.random.PRNGKey(1), 256, 128)
    loss2 = jax.block_until_ready(clip_loss(img2, txt2, logit_scale, tile=128))
    ref2 = jax.block_until_ready(clip_loss_ref(img2, txt2, logit_scale))
    assert jnp.allclose(loss2, ref2, rtol=1e-4, atol=1e-4), (loss2, ref2)

    # bf16 inputs exercise the native-dtype MXU path (f32 accumulation).
    img3, txt3 = make_inputs(jax.random.PRNGKey(2), 256, 128, dtype=jnp.bfloat16)
    loss3 = jax.block_until_ready(clip_loss(img3, txt3, logit_scale, tile=128))
    ref3 = jax.block_until_ready(clip_loss_ref(img3, txt3, logit_scale))
    assert jnp.allclose(loss3, ref3, rtol=3e-2, atol=3e-2), (loss3, ref3)

    print("KERNEL_OK")
</pallas_src>

<mosaic_0001>
module attributes {stable_mosaic.version = 11 : i64} {
  func.func @_clip_loss_kernel(%arg0: i32, %arg1: i32, %arg2: memref<1x1xf32, #tpu.memory_space<smem>>, %arg3: memref<8x32xf32, #tpu.memory_space<vmem>>, %arg4: memref<8x32xf32, #tpu.memory_space<vmem>>, %arg5: memref<1x1xf32, #tpu.memory_space<vmem>>, %arg6: memref<8x1xf32, #tpu.memory_space<vmem>>, %arg7: memref<8x1xf32, #tpu.memory_space<vmem>>, %arg8: memref<1x1x8xf32, #tpu.memory_space<vmem>>, %arg9: memref<1x1x8xf32, #tpu.memory_space<vmem>>, %arg10: memref<1x1xf32, #tpu.memory_space<vmem>>) attributes {dimension_semantics = [#tpu.dimension_semantics<arbitrary>, #tpu.dimension_semantics<arbitrary>], iteration_bounds = array<i64: 1, 1>, scalar_prefetch = 0 : i64, scratch_operands = 5 : i64, tpu.core_type = #tpu.core_type<tc>, window_params = [{transform_indices = @transform_0, window_bounds = array<i64: 1, 1>}, {transform_indices = @transform_1, window_bounds = array<i64: 8, 32>}, {transform_indices = @transform_2, window_bounds = array<i64: 8, 32>}, {pipeline_mode = #tpu.pipeline_mode<synchronous>, transform_indices = @transform_3, window_bounds = array<i64: 1, 1>}]} {
    %c0 = arith.constant 0 : index
    %c0_0 = arith.constant 0 : index
    %0 = memref.load %arg2[%c0, %c0_0] : memref<1x1xf32, #tpu.memory_space<smem>>
    %c0_i32 = arith.constant 0 : i32
    %1 = arith.cmpi eq, %arg0, %c0_i32 : i32
    %c0_i32_1 = arith.constant 0 : i32
    %2 = arith.cmpi eq, %arg1, %c0_i32_1 : i32
    %3 = arith.andi %1, %2 : i1
    %4 = arith.extui %3 : i1 to i32
    %c0_i32_2 = arith.constant 0 : i32
    %5 = arith.cmpi ne, %4, %c0_i32_2 : i32
    scf.if %5 {
      %cst_41 = arith.constant 0.000000e+00 : f32
      %74 = vector.broadcast %cst_41 : f32 to vector<1x1xf32>
      %c0_42 = arith.constant 0 : index
      %c0_43 = arith.constant 0 : index
      %75 = vector.load %arg10[%c0_42, %c0_43] : memref<1x1xf32, #tpu.memory_space<vmem>>, vector<1x1xf32>
      tpu.vector_store %arg10[%c0_42, %c0_43], %74 {strides = array<i32>} : memref<1x1xf32, #tpu.memory_space<vmem>>, vector<1x1xf32>,
    } else {
    }
    %c0_i32_3 = arith.constant 0 : i32
    %6 = arith.cmpi eq, %arg1, %c0_i32_3 : i32
    %7 = arith.extui %6 : i1 to i32
    %c0_i32_4 = arith.constant 0 : i32
    %8 = arith.cmpi ne, %7, %c0_i32_4 : i32
    scf.if %8 {
      %cst_41 = arith.constant 0xFF800000 : f32
      %74 = vector.broadcast %cst_41 : f32 to vector<8x1xf32>
      %c0_42 = arith.constant 0 : index
      %c0_43 = arith.constant 0 : index
      %75 = vector.load %arg6[%c0_42, %c0_43] : memref<8x1xf32, #tpu.memory_space<vmem>>, vector<8x1xf32>
      tpu.vector_store %arg6[%c0_42, %c0_43], %74 {strides = array<i32>} : memref<8x1xf32, #tpu.memory_space<vmem>>, vector<8x1xf32>,
      %cst_44 = arith.constant 0.000000e+00 : f32
      %76 = vector.broadcast %cst_44 : f32 to vector<8x1xf32>
      %c0_45 = arith.constant 0 : index
      %c0_46 = arith.constant 0 : index
      %77 = vector.load %arg7[%c0_45, %c0_46] : memref<8x1xf32, #tpu.memory_space<vmem>>, vector<8x1xf32>
      tpu.vector_store %arg7[%c0_45, %c0_46], %76 {strides = array<i32>} : memref<8x1xf32, #tpu.memory_space<vmem>>, vector<8x1xf32>,
    } else {
    }
    %c0_i32_5 = arith.constant 0 : i32
    %9 = arith.cmpi eq, %arg0, %c0_i32_5 : i32
    %10 = arith.extui %9 : i1 to i32
    %c0_i32_6 = arith.constant 0 : i32
    %11 = arith.cmpi ne, %10, %c0_i32_6 : i32
    scf.if %11 {
      %cst_41 = arith.constant 0xFF800000 : f32
      %74 = vector.broadcast %cst_41 : f32 to vector<1x8xf32>
      %75 = arith.index_cast %arg1 : i32 to index
      %c0_42 = arith.constant 0 : index
      %c0_43 = arith.constant 0 : index
      %76 = vector.load %arg8[%75, %c0_42, %c0_43] : memref<1x1x8xf32, #tpu.memory_space<vmem>>, vector<1x1x8xf32>
      %77 = vector.shape_cast %76 : vector<1x1x8xf32> to vector<1x8xf32>
      %78 = vector.shape_cast %74 : vector<1x8xf32> to vector<1x1x8xf32>
      tpu.vector_store %arg8[%75, %c0_42, %c0_43], %78 {strides = array<i32>} : memref<1x1x8xf32, #tpu.memory_space<vmem>>, vector<1x1x8xf32>,
      %cst_44 = arith.constant 0.000000e+00 : f32
      %79 = vector.broadcast %cst_44 : f32 to vector<1x8xf32>
      %80 = arith.index_cast %arg1 : i32 to index
      %c0_45 = arith.constant 0 : index
      %c0_46 = arith.constant 0 : index
      %81 = vector.load %arg9[%80, %c0_45, %c0_46] : memref<1x1x8xf32, #tpu.memory_space<vmem>>, vector<1x1x8xf32>
      %82 = vector.shape_cast %81 : vector<1x1x8xf32> to vector<1x8xf32>
      %83 = vector.shape_cast %79 : vector<1x8xf32> to vector<1x1x8xf32>
      tpu.vector_store %arg9[%80, %c0_45, %c0_46], %83 {strides = array<i32>} : memref<1x1x8xf32, #tpu.memory_space<vmem>>, vector<1x1x8xf32>,
    } else {
    }
    %c0_7 = arith.constant 0 : index
    %c0_8 = arith.constant 0 : index
    %12 = vector.load %arg3[%c0_7, %c0_8] : memref<8x32xf32, #tpu.memory_space<vmem>>, vector<8x32xf32>
    %c0_9 = arith.constant 0 : index
    %c0_10 = arith.constant 0 : index
    %13 = vector.load %arg4[%c0_9, %c0_10] : memref<8x32xf32, #tpu.memory_space<vmem>>, vector<8x32xf32>
    %cst = arith.constant dense<0.000000e+00> : vector<8x8xf32>
    %14 = tpu.matmul %12, %13, %cst {dimension_numbers = #tpu.dot_dimension_numbers<[1], [1], [0], [0], [0, 0, 1, 0], [], []>} : vector<8x32xf32>, vector<8x32xf32>, vector<8x8xf32> -> vector<8x8xf32>
    %15 = vector.broadcast %0 : f32 to vector<8x8xf32>
    %16 = arith.mulf %14, %15 : vector<8x8xf32>
    %cst_11 = arith.constant dense<0xFF800000> : vector<8xf32>
    %17 = vector.multi_reduction <maximumf>, %16, %cst_11 [1] : vector<8x8xf32> to vector<8xf32>
    %18 = vector.shape_cast %17 : vector<8xf32> to vector<8x1xf32>
    %c0_12 = arith.constant 0 : index
    %c0_13 = arith.constant 0 : index
    %19 = vector.load %arg6[%c0_12, %c0_13] : memref<8x1xf32, #tpu.memory_space<vmem>>, vector<8x1xf32>
    %20 = arith.maximumf %19, %18 : vector<8x1xf32>
    %c0_14 = arith.constant 0 : index
    %c0_15 = arith.constant 0 : index
    %21 = vector.load %arg6[%c0_14, %c0_15] : memref<8x1xf32, #tpu.memory_space<vmem>>, vector<8x1xf32>
    %22 = arith.subf %21, %20 : vector<8x1xf32>
    %23 = math.exp %22 : vector<8x1xf32>
    %c0_16 = arith.constant 0 : index
    %c0_17 = arith.constant 0 : index
    %24 = vector.load %arg7[%c0_16, %c0_17] : memref<8x1xf32, #tpu.memory_space<vmem>>, vector<8x1xf32>
    %25 = arith.mulf %23, %24 : vector<8x1xf32>
    %26 = vector.broadcast %20 : vector<8x1xf32> to vector<8x8xf32>
    %27 = arith.subf %16, %26 : vector<8x8xf32>
    %28 = math.exp %27 : vector<8x8xf32>
    %cst_18 = arith.constant dense<0.000000e+00> : vector<8xf32>
    %29 = vector.multi_reduction <add>, %28, %cst_18 [1] : vector<8x8xf32> to vector<8xf32>
    %30 = vector.shape_cast %29 : vector<8xf32> to vector<8x1xf32>
    %31 = arith.addf %25, %30 : vector<8x1xf32>
    %c0_19 = arith.constant 0 : index
    %c0_20 = arith.constant 0 : index
    %32 = vector.load %arg7[%c0_19, %c0_20] : memref<8x1xf32, #tpu.memory_space<vmem>>, vector<8x1xf32>
    tpu.vector_store %arg7[%c0_19, %c0_20], %31 {strides = array<i32>} : memref<8x1xf32, #tpu.memory_space<vmem>>, vector<8x1xf32>,
    %c0_21 = arith.constant 0 : index
    %c0_22 = arith.constant 0 : index
    %33 = vector.load %arg6[%c0_21, %c0_22] : memref<8x1xf32, #tpu.memory_space<vmem>>, vector<8x1xf32>
    tpu.vector_store %arg6[%c0_21, %c0_22], %20 {strides = array<i32>} : memref<8x1xf32, #tpu.memory_space<vmem>>, vector<8x1xf32>,
    %cst_23 = arith.constant dense<0xFF800000> : vector<8xf32>
    %34 = vector.multi_reduction <maximumf>, %16, %cst_23 [0] : vector<8x8xf32> to vector<8xf32>
    %35 = vector.shape_cast %34 : vector<8xf32> to vector<1x8xf32>
    %36 = arith.index_cast %arg1 : i32 to index
    %c0_24 = arith.constant 0 : index
    %c0_25 = arith.constant 0 : index
    %37 = vector.load %arg8[%36, %c0_24, %c0_25] : memref<1x1x8xf32, #tpu.memory_space<vmem>>, vector<1x1x8xf32>
    %38 = vector.shape_cast %37 : vector<1x1x8xf32> to vector<1x8xf32>
    %39 = arith.index_cast %arg1 : i32 to index
    %c0_26 = arith.constant 0 : index
    %c0_27 = arith.constant 0 : index
    %40 = vector.load %arg9[%39, %c0_26, %c0_27] : memref<1x1x8xf32, #tpu.memory_space<vmem>>, vector<1x1x8xf32>
    %41 = vector.shape_cast %40 : vector<1x1x8xf32> to vector<1x8xf32>
    %42 = arith.maximumf %38, %35 : vector<1x8xf32>
    %43 = arith.subf %38, %42 : vector<1x8xf32>
    %44 = math.exp %43 : vector<1x8xf32>
    %45 = arith.mulf %44, %41 : vector<1x8xf32>
    %46 = vector.broadcast %42 : vector<1x8xf32> to vector<8x8xf32>
    %47 = arith.subf %16, %46 : vector<8x8xf32>
    %48 = math.exp %47 : vector<8x8xf32>
    %cst_28 = arith.constant dense<0.000000e+00> : vector<8xf32>
    %49 = vector.multi_reduction <add>, %48, %cst_28 [0] : vector<8x8xf32> to vector<8xf32>
    %50 = vector.shape_cast %49 : vector<8xf32> to vector<1x8xf32>
    %51 = arith.addf %45, %50 : vector<1x8xf32>
    %52 = arith.index_cast %arg1 : i32 to index
    %c0_29 = arith.constant 0 : index
    %c0_30 = arith.constant 0 : index
    %53 = vector.load %arg9[%52, %c0_29, %c0_30] : memref<1x1x8xf32, #tpu.memory_space<vmem>>, vector<1x1x8xf32>
    %54 = vector.shape_cast %53 : vector<1x1x8xf32> to vector<1x8xf32>
    %55 = vector.shape_cast %51 : vector<1x8xf32> to vector<1x1x8xf32>
    tpu.vector_store %arg9[%52, %c0_29, %c0_30], %55 {strides = array<i32>} : memref<1x1x8xf32, #tpu.memory_space<vmem>>, vector<1x1x8xf32>,
    %56 = arith.index_cast %arg1 : i32 to index
    %c0_31 = arith.constant 0 : index
    %c0_32 = arith.constant 0 : index
    %57 = vector.load %arg8[%56, %c0_31, %c0_32] : memref<1x1x8xf32, #tpu.memory_space<vmem>>, vector<1x1x8xf32>
    %58 = vector.shape_cast %57 : vector<1x1x8xf32> to vector<1x8xf32>
    %59 = vector.shape_cast %42 : vector<1x8xf32> to vector<1x1x8xf32>
    tpu.vector_store %arg8[%56, %c0_31, %c0_32], %59 {strides = array<i32>} : memref<1x1x8xf32, #tpu.memory_space<vmem>>, vector<1x1x8xf32>,
    %60 = arith.cmpi eq, %arg0, %arg1 : i32
    %61 = arith.extui %60 : i1 to i32
    %c0_i32_33 = arith.constant 0 : i32
    %62 = arith.cmpi ne, %61, %c0_i32_33 : i32
    scf.if %62 {
      %74 = arith.mulf %12, %13 : vector<8x32xf32>
      %75 = vector.shape_cast %74 : vector<8x32xf32> to vector<1x8x32xf32>
      %cst_41 = arith.constant dense<0.000000e+00> : vector<1xf32>
      %76 = vector.multi_reduction <add>, %75, %cst_41 [1, 2] : vector<1x8x32xf32> to vector<1xf32>
      %77 = vector.shape_cast %76 : vector<1xf32> to vector<1x1x1xf32>
      %78 = vector.extract %77[0, 0, 0] : f32 from vector<1x1x1xf32>
      %79 = vector.broadcast %78 : f32 to vector<1x1xf32>
      %c0_42 = arith.constant 0 : index
      %c0_43 = arith.constant 0 : index
      %80 = vector.load %arg10[%c0_42, %c0_43] : memref<1x1xf32, #tpu.memory_space<vmem>>, vector<1x1xf32>
      %cst_44 = arith.constant -2.000000e+00 : f32
      %81 = arith.mulf %cst_44, %0 : f32
      %82 = vector.broadcast %81 : f32 to vector<1x1xf32>
      %83 = arith.mulf %82, %79 : vector<1x1xf32>
      %84 = arith.addf %80, %83 : vector<1x1xf32>
      %c0_45 = arith.constant 0 : index
      %c0_46 = arith.constant 0 : index
      %85 = vector.load %arg10[%c0_45, %c0_46] : memref<1x1xf32, #tpu.memory_space<vmem>>, vector<1x1xf32>
      tpu.vector_store %arg10[%c0_45, %c0_46], %84 {strides = array<i32>} : memref<1x1xf32, #tpu.memory_space<vmem>>, vector<1x1xf32>,
    } else {
    }
    %c0_i32_34 = arith.constant 0 : i32
    %63 = arith.cmpi eq, %arg1, %c0_i32_34 : i32
    %64 = arith.extui %63 : i1 to i32
    %c0_i32_35 = arith.constant 0 : i32
    %65 = arith.cmpi ne, %64, %c0_i32_35 : i32
    scf.if %65 {
      %c0_41 = arith.constant 0 : index
      %c0_42 = arith.constant 0 : index
      %74 = vector.load %arg10[%c0_41, %c0_42] : memref<1x1xf32, #tpu.memory_space<vmem>>, vector<1x1xf32>
      %c0_43 = arith.constant 0 : index
      %c0_44 = arith.constant 0 : index
      %75 = vector.load %arg6[%c0_43, %c0_44] : memref<8x1xf32, #tpu.memory_space<vmem>>, vector<8x1xf32>
      %c0_45 = arith.constant 0 : index
      %c0_46 = arith.constant 0 : index
      %76 = vector.load %arg7[%c0_45, %c0_46] : memref<8x1xf32, #tpu.memory_space<vmem>>, vector<8x1xf32>
      %77 = math.log %76 : vector<8x1xf32>
      %78 = arith.addf %75, %77 : vector<8x1xf32>
      %79 = vector.shape_cast %78 : vector<8x1xf32> to vector<1x8x1xf32>
      %cst_47 = arith.constant dense<0.000000e+00> : vector<1xf32>
      %80 = vector.multi_reduction <add>, %79, %cst_47 [1, 2] : vector<1x8x1xf32> to vector<1xf32>
      %81 = vector.shape_cast %80 : vector<1xf32> to vector<1x1x1xf32>
      %82 = vector.extract %81[0, 0, 0] : f32 from vector<1x1x1xf32>
      %83 = vector.broadcast %82 : f32 to vector<1x1xf32>
      %84 = arith.addf %74, %83 : vector<1x1xf32>
      %c0_48 = arith.constant 0 : index
      %c0_49 = arith.constant 0 : index
      %85 = vector.load %arg10[%c0_48, %c0_49] : memref<1x1xf32, #tpu.memory_space<vmem>>, vector<1x1xf32>
      tpu.vector_store %arg10[%c0_48, %c0_49], %84 {strides = array<i32>} : memref<1x1xf32, #tpu.memory_space<vmem>>, vector<1x1xf32>,
    } else {
    }
    %c0_i32_36 = arith.constant 0 : i32
    %66 = arith.cmpi eq, %arg0, %c0_i32_36 : i32
    %67 = arith.extui %66 : i1 to i32
    %c0_i32_37 = arith.constant 0 : i32
    %68 = arith.cmpi ne, %67, %c0_i32_37 : i32
    scf.if %68 {
      %c0_41 = arith.constant 0 : index
      %c0_42 = arith.constant 0 : index
      %74 = vector.load %arg10[%c0_41, %c0_42] : memref<1x1xf32, #tpu.memory_space<vmem>>, vector<1x1xf32>
      %75 = arith.index_cast %arg1 : i32 to index
      %c0_43 = arith.constant 0 : index
      %c0_44 = arith.constant 0 : index
      %76 = vector.load %arg8[%75, %c0_43, %c0_44] : memref<1x1x8xf32, #tpu.memory_space<vmem>>, vector<1x1x8xf32>
      %77 = vector.shape_cast %76 : vector<1x1x8xf32> to vector<1x8xf32>
      %78 = arith.index_cast %arg1 : i32 to index
      %c0_45 = arith.constant 0 : index
      %c0_46 = arith.constant 0 : index
      %79 = vector.load %arg9[%78, %c0_45, %c0_46] : memref<1x1x8xf32, #tpu.memory_space<vmem>>, vector<1x1x8xf32>
      %80 = vector.shape_cast %79 : vector<1x1x8xf32> to vector<1x8xf32>
      %81 = math.log %80 : vector<1x8xf32>
      %82 = arith.addf %77, %81 : vector<1x8xf32>
      %83 = vector.shape_cast %82 : vector<1x8xf32> to vector<1x1x8xf32>
      %cst_47 = arith.constant dense<0.000000e+00> : vector<1xf32>
      %84 = vector.multi_reduction <add>, %83, %cst_47 [1, 2] : vector<1x1x8xf32> to vector<1xf32>
      %85 = vector.shape_cast %84 : vector<1xf32> to vector<1x1x1xf32>
      %86 = vector.extract %85[0, 0, 0] : f32 from vector<1x1x1xf32>
      %87 = vector.broadcast %86 : f32 to vector<1x1xf32>
      %88 = arith.addf %74, %87 : vector<1x1xf32>
      %c0_48 = arith.constant 0 : index
      %c0_49 = arith.constant 0 : index
      %89 = vector.load %arg10[%c0_48, %c0_49] : memref<1x1xf32, #tpu.memory_space<vmem>>, vector<1x1xf32>
      tpu.vector_store %arg10[%c0_48, %c0_49], %88 {strides = array<i32>} : memref<1x1xf32, #tpu.memory_space<vmem>>, vector<1x1xf32>,
    } else {
    }
    %c0_i32_38 = arith.constant 0 : i32
    %69 = arith.cmpi eq, %arg0, %c0_i32_38 : i32
    %c0_i32_39 = arith.constant 0 : i32
    %70 = arith.cmpi eq, %arg1, %c0_i32_39 : i32
    %71 = arith.andi %69, %70 : i1
    %72 = arith.extui %71 : i1 to i32
    %c0_i32_40 = arith.constant 0 : i32
    %73 = arith.cmpi ne, %72, %c0_i32_40 : i32
    scf.if %73 {
      %c0_41 = arith.constant 0 : index
      %c0_42 = arith.constant 0 : index
      %74 = vector.load %arg10[%c0_41, %c0_42] : memref<1x1xf32, #tpu.memory_space<vmem>>, vector<1x1xf32>
      %cst_43 = arith.constant 6.250000e-02 : f32
      %75 = vector.broadcast %cst_43 : f32 to vector<1x1xf32>
      %76 = arith.mulf %74, %75 : vector<1x1xf32>
      %c0_44 = arith.constant 0 : index
      %c0_45 = arith.constant 0 : index
      %77 = vector.load %arg5[%c0_44, %c0_45] : memref<1x1xf32, #tpu.memory_space<vmem>>, vector<1x1xf32>
      tpu.vector_store %arg5[%c0_44, %c0_45], %76 {strides = array<i32>} : memref<1x1xf32, #tpu.memory_space<vmem>>, vector<1x1xf32>,
    } else {
    }
    return
  }
  func.func @transform_0(%arg0: i32, %arg1: i32) -> (i32, i32) {
    %c0_i32 = arith.constant 0 : i32
    %c0_i32_0 = arith.constant 0 : i32
    %c0_i32_1 = arith.constant 0 : i32
    return %c0_i32, %c0_i32_0 : i32, i32
  }
  func.func @transform_1(%arg0: i32, %arg1: i32) -> (i32, i32) {
    %c0_i32 = arith.constant 0 : i32
    %c0_i32_0 = arith.constant 0 : i32
    return %arg0, %c0_i32 : i32, i32
  }
  func.func @transform_2(%arg0: i32, %arg1: i32) -> (i32, i32) {
    %c0_i32 = arith.constant 0 : i32
    %c0_i32_0 = arith.constant 0 : i32
    return %arg1, %c0_i32 : i32, i32
  }
  func.func @transform_3(%arg0: i32, %arg1: i32) -> (i32, i32) {
    %c0_i32 = arith.constant 0 : i32
    %c0_i32_0 = arith.constant 0 : i32
    %c0_i32_1 = arith.constant 0 : i32
    return %c0_i32, %c0_i32_0 : i32, i32
  }
}

</mosaic_0001>

<bundles_post_ra>
// kernel: tpu_custom_call.1
= control target key start
LH: loop header
LB: loop body
LE: loop exit
PB: predicated region body
PF: predicated region fallthrough
CT: control target
= control target key end

     0   :  { %9 = vsyncpa [#allocation9], 0  ;;  %s465_s0 = inlined_call_operand.<no memory space> [shape: f32[1,1], index: 0, kind: input, shape index: {}]   ;;  %s466_s1 = inlined_call_operand.hbm [shape: f32[8,32], index: 1, kind: input, shape index: {}]   ;;  %s467_s2 = inlined_call_operand.hbm [shape: f32[8,32], index: 2, kind: input, shape index: {}]   ;;  %s468_s3 = inlined_call_operand.hbm [shape: f32[1,1], index: 3, kind: output, shape index: {}]  }
   0x1   :  { %10 = vsyncpa [#allocation12], 0 }
   0x2   :  { %11 = vsyncpa [#allocation10], 0  ;;  %s393_s12 = smov [#allocation8]   ;;  %s394_s14 = smov [#allocation11]  }
   0x3   :  { %s20_s13 = sshll.u32 %s393_s12, 4  ;;  %s30_s15 = sshll.u32 %s394_s14, 4  ;;  %s21_s13 = int_to_ptr.vmem [resolvable:$true] %s20_s13  ;;  %s31_s15 = int_to_ptr.vmem [resolvable:$true] %s30_s15 }
   0x4   :  { %s335_s16 = scalar_lea.vmem %s21_s13, 128  ;;  %p340_p1 = scmp.lt.s32.totalorder %s21_s13, %s21_s13 }
   0x5   :  { %p336_p0 = scmp.ne.s32.totalorder %s21_s13, %s335_s16  ;;  %p341_p2 = scmp.lt.s32.totalorder %s335_s16, %s335_s16 }
   0x7   :  { %p342_p3 = por %p341_p2, %p340_p1 }
   0x9   :  { %p343_p4 = pnand %p342_p3, %p336_p0 }
   0xb   :  { %346 = shalt.err (!%p343_p4)
}
   0xc   :  { %23 = dma.hbm_to_vmem [thread:$0]  %s466_s1, 128, %s21_s13, [#allocation9]  }
   0xd   :  { %s355_s19 = scalar_lea.vmem %s31_s15, 128  ;;  %p360_p6 = scmp.lt.s32.totalorder %s31_s15, %s31_s15 }
   0xe   :  { %p356_p5 = scmp.ne.s32.totalorder %s31_s15, %s355_s19  ;;  %p361_p7 = scmp.lt.s32.totalorder %s355_s19, %s355_s19 }
  0x10   :  { %p362_p8 = por %p361_p7, %p360_p6 }
  0x12   :  { %p363_p9 = pnand %p362_p8, %p356_p5 }
  0x14   :  { %366 = shalt.err (!%p363_p9)
}
  0x15   :  { %33 = dma.hbm_to_vmem [thread:$0]  %s467_s2, 128, %s31_s15, [#allocation12]  }
  0x16   :  { %387 = dma.done.wait [#allocation9], 128  }
  0x17   :  { %388 = vsyncadd [#allocation9], 4294967168 }
  0x18   :  { %389 = dma.done.wait [#allocation12], 128  }
  0x19   :  { %390 = vsyncadd [#allocation12], 4294967168  ;;  %vm52_vm0 = vcmask 7168   ;;  %v395_v0 = vmov 0.0   ;;  %vm396_vm1 = vmmov 0   ;;  %vm63_vm2 = vcmask 261120  }
  0x1a   :  { %54 = vst.msk [vmem:[#allocation3] sm:$0xff] %vm52_vm0, %v395_v0  ;;  %296 = vmatprep.subr.mxu0 %v395_v0  ;;  %298 = vmatprep.mubr.msk.f32.mxu0 %vm396_vm1, %v395_v0  ;;  %v430_v1 = vld [vmem:[#allocation11] sm:$0xff]  ;;  %v61_v2 = vld [vmem:[#allocation8] sm:$0xff]  ;;  %vm58_vm3 = vcmask 57344   ;;  %v397_v3 = vmov -inf   ;;  %v140_v4 = vstv %s465_s0  ;;  %vm142_vm4 = vcmask 64512  }
  0x1b   :  { %297 = vmatpush3.xpose.msk.msra.mxu0 %vm63_vm2, %v430_v1  ;;  %59 = vst.msk [vmem:[#allocation4] sm:$0x1] %vm58_vm3, %v397_v3  ;;  %60 = vst.msk [vmem:[#allocation5] sm:$0x1] %vm58_vm3, %v395_v0  ;;  %v182_v10 = vlaneseq  ;;  %v398_v19 = vmov 0   ;;  %v205_v47 = vmul.f32 %v430_v1, %v61_v2  ;;  %vm47_vm5 = vcmask 0  }
  0x1c   :  { %53 = vst.msk [vmem:[#allocation2] sm:$0xff] %vm52_vm0, %v397_v3  ;;  %314 = vset.pattern.permute.xlu0 %v398_v19  ;;  %s218_s24 = smul.f32 -2.0, %s465_s0  ;;  %s399_s27 = smov [#allocation13]  }
  0x1d   :  { %v183_v13 = vshrl.u32 %v182_v10, 7  ;;  %v206_v48 = vsel %vm63_vm2, %v205_v47, 0.0  ;;  %48 = vst.msk [vmem:[#allocation6] sm:$0x1] %vm47_vm5, %v395_v0  ;;  %s282_s28 = sshll.u32 %s399_s27, 4  ;;  %s283_s28 = int_to_ptr.vmem [resolvable:$true] %s282_s28 }
  0x1e   :  { %299 = vmatmul.mubr.msk.f32.vlgmr.msra.gmra.mxu0 %vm63_vm2, %v61_v2  ;;  %s367_s29 = scalar_lea.vmem %s283_s28, 16  ;;  %s371_s30 = scalar_lea.vmem %s283_s28, 32 }
  0x1f   :  { %v184_v17 = vsub.s32 0, %v183_v13  ;;  %p368_p10 = scmp.ne.s32.totalorder %s283_s28, %s367_s29  ;;  %p372_p11 = scmp.lt.s32.totalorder %s283_s28, %s283_s28 }
  0x20   :  { %p373_p12 = scmp.lt.s32.totalorder %s371_s30, %s367_s29 }
  0x21   :  { %v151_v51 = vld [vmem:[#allocation3] sm:$0xff] }
  0x22   :  { %v174_v16 = vld [vmem:[#allocation4] sm:$0x1]  ;;  %v175_v33 = vld [vmem:[#allocation5] sm:$0x1]  ;;  %p374_p13 = por %p373_p12, %p372_p11 }
  0x23   :  { %v146_v38 = vld [vmem:[#allocation2] sm:$0xff] }
  0x24   :  { %v217_v13 = vld [vmem:[#allocation6] sm:$0x1]  ;;  %p375_p0 = pnand %p374_p13, %p368_p10 }
  0xde   :  { %v136_v5 = vpop.f32.mrf.mxu0 }
  0xdf   :  { %v141_v6 = vmul.f32 %v140_v4, %v136_v5 }
  0xe0   :  { %v300_v7 = vpop.f32.mrf.mxu0 }
  0xe1   :  { %v143_v8 = vsel %vm142_vm4, %v141_v6, -inf }
  0xe2   :  { %144 = vmax.xlane.f32.xlu0 %v143_v8  ;;  %v168_v9 = vrot.slane %v143_v8, 4 }
  0xe4   :  { %v169_v11 = vmax.f32 %v143_v8, %v168_v9 }
  0xe6   :  { %v170_v12 = vrot.slane %v169_v11, 2 }
  0xe8   :  { %v171_v14 = vmax.f32 %v169_v11, %v170_v12  ;;  %v219_v11 = vstv %s218_s24 }
  0xea   :  { %v172_v15 = vrot.slane %v171_v14, 1 }
  0xec   :  { %v173_v18 = vmax.f32 %v171_v14, %v172_v15 }
  0xee   :  { %v176_v20 = vmax.f32 %v174_v16, %v173_v18 }
  0xf0   :  { %v185_v21 = vrot.slane %v176_v20, %v184_v17  ;;  %200 = vst.msk [vmem:[#allocation4] sm:$0x1] %vm58_vm3, %v176_v20  ;;  %v177_v24 = vsub.f32 %v174_v16, %v176_v20 }
  0xf2   :  { %v187_v22 = vsub.f32 %v141_v6, %v185_v21  ;;  %v178_v25 = vmul.f32 1.442695, %v177_v24 }
  0xf4   :  { %v188_v23 = vmul.f32 1.442695, %v187_v22 }
  0xf6   :  { %315 = vpow2.f32 %v188_v23 }
  0xf7   :  { %317 = vpow2.f32 %v178_v25  ;;  %v251_v7 = vld [vmem:[#allocation4] sm:$0x1] }
 0x103   :  { %v316_v26 = vpop.eup %315 }
 0x104   :  { %v190_v27 = vsel %vm142_vm4, %v316_v26, 0.0  ;;  %v318_v32 = vpop.eup %317 }
 0x105   :  { %v191_v28 = vrot.slane %v190_v27, 4  ;;  %v180_v36 = vmul.f32 %v318_v32, %v175_v33 }
 0x107   :  { %v192_v29 = vadd.f32 %v191_v28, %v190_v27 }
 0x109   :  { %v193_v30 = vrot.slane %v192_v29, 2 }
 0x10b   :  { %v194_v31 = vadd.f32 %v193_v30, %v192_v29 }
 0x10d   :  { %v195_v34 = vrot.slane %v194_v31, 1 }
 0x10f   :  { %v196_v35 = vadd.f32 %v195_v34, %v194_v31 }
 0x111   :  { %v197_v37 = vadd.f32 %v196_v35, %v180_v36 }
 0x113   :  { %199 = vst.msk [vmem:[#allocation5] sm:$0x1] %vm58_vm3, %v197_v37 }
 0x11a   :  { %v252_v55 = vld [vmem:[#allocation5] sm:$0x1] }
 0x16b   :  { %v145_v39 = vpop.xlane.xlu0 %144 }
 0x16c   :  { %v147_v40 = vmax.f32 %v146_v38, %v145_v39 }
 0x16e   :  { %v148_v41 = vsub.f32 %v146_v38, %v147_v40  ;;  %167 = vst.msk [vmem:[#allocation2] sm:$0xff] %vm52_vm0, %v147_v40  ;;  %155 = vperm.xlu0 %314, %v147_v40  }
 0x170   :  { %v149_v49 = vmul.f32 1.442695, %v148_v41 }
 0x175   :  { %v228_v4 = vld [vmem:[#allocation2] sm:$0xff] }
 0x1e9   :  { %v156_v42 = vpop.permute.xlu0 %155 }
 0x1ea   :  { %v158_v43 = vsub.f32 %v141_v6, %v156_v42 }
 0x1ec   :  { %v159_v44 = vmul.f32 1.442695, %v158_v43 }
 0x1ee   :  { %319 = vpow2.f32 %v159_v44 }
 0x1ef   :  { %321 = vpow2.f32 %v149_v49 }
 0x1f0   :  { %323 = vlog2.f32 %v252_v55 }
 0x1fb   :  { %v320_v45 = vpop.eup %319 }
 0x1fc   :  { %v161_v46 = vsel %vm142_vm4, %v320_v45, 0.0  ;;  %v322_v50 = vpop.eup %321 }
 0x1fd   :  { %162 = vadd.xlane.f32.xlu1 %v161_v46  ;;  %v152_v52 = vmul.f32 %v322_v50, %v151_v51  ;;  %v324_v61 = vpop.eup %323 }
 0x1fe   :  { %v254_v3 = vmul.f32 0.6931472, %v324_v61 }
 0x200   :  { %v255_v9 = vadd.f32 %v254_v3, %v251_v7 }
 0x201   :  { %207 = vadd.xlane.f32.xlu1 %v206_v48 }
 0x202   :  { %v256_v10 = vsel %vm58_vm3, %v255_v9, 0.0 }
 0x286   :  { %v163_v53 = vpop.xlane.xlu1 %162 }
 0x287   :  { %v164_v54 = vadd.f32 %v163_v53, %v152_v52 }
 0x289   :  { %166 = vst.msk [vmem:[#allocation3] sm:$0xff] %vm52_vm0, %v164_v54 }
 0x28a   :  { %v208_v57 = vpop.xlane.xlu1 %207 }
 0x28b   :  { %v209_v58 = vrot.slane %v208_v57, 4 }
 0x28d   :  { %v210_v59 = vadd.f32 %v209_v58, %v208_v57 }
 0x28f   :  { %v211_v60 = vrot.slane %v210_v59, 2 }
 0x290   :  { %v229_v56 = vld [vmem:[#allocation3] sm:$0xff] }
 0x291   :  { %325 = vlog2.f32 %v229_v56  ;;  %v212_v62 = vadd.f32 %v211_v60, %v210_v59 }
 0x293   :  { %v213_v1 = vrot.slane %v212_v62, 1 }
 0x295   :  { %v214_v5 = vadd.f32 %v213_v1, %v212_v62 }
 0x297   :  { %301 = vpush %v214_v5 }
 0x29e   :  { %v326_v63 = vpop.eup %325 }
 0x29f   :  { %v231_v2 = vmul.f32 0.6931472, %v326_v63 }
 0x2a1   :  { %v232_v6 = vadd.f32 %v231_v2, %v228_v4 }
 0x2a3   :  { %v233_v8 = vsel %vm52_vm0, %v232_v6, 0.0 }
 0x2a4   :  { %234 = vadd.xlane.f32.xlu1 %v233_v8 }
 0x2a8   :  { %257 = vadd.xlane.f32.xlu1 %v256_v10 }
 0x2c8   :  { %s302_s25 = spop %301 }
 0x2c9   :  { %v216_v12 = vstv %s302_s25 }
 0x2ca   :  { %v220_v14 = vmul.f32 %v219_v11, %v216_v12 }
 0x2cc   :  { %v221_v15 = vadd.f32 %v220_v14, %v217_v13 }
 0x2ce   :  { %223 = vst.msk [vmem:[#allocation6] sm:$0x1] %vm47_vm5, %v221_v15 }
 0x2d5   :  { %v227_v29 = vld [vmem:[#allocation6] sm:$0x1] }
 0x32d   :  { %v235_v16 = vpop.xlane.xlu1 %234 }
 0x32e   :  { %v236_v17 = vrot.slane %v235_v16, 4 }
 0x330   :  { %v237_v18 = vadd.f32 %v236_v17, %v235_v16 }
 0x331   :  { %v258_v19 = vpop.xlane.xlu1 %257 }
 0x332   :  { %v238_v20 = vrot.slane %v237_v18, 2  ;;  %v259_v21 = vrot.slane %v258_v19, 4 }
 0x334   :  { %v260_v22 = vadd.f32 %v259_v21, %v258_v19  ;;  %v239_v0 = vadd.f32 %v238_v20, %v237_v18 }
 0x336   :  { %v261_v23 = vrot.slane %v260_v22, 2  ;;  %v240_v24 = vrot.slane %v239_v0, 1 }
 0x338   :  { %v262_v25 = vadd.f32 %v261_v23, %v260_v22  ;;  %v241_v26 = vadd.f32 %v240_v24, %v239_v0 }
 0x33a   :  { %303 = vpush %v241_v26  ;;  %v263_v27 = vrot.slane %v262_v25, 1 }
 0x33c   :  { %v264_v28 = vadd.f32 %v263_v27, %v262_v25 }
 0x33e   :  { %305 = vpush %v264_v28 }
 0x36b   :  { %s304_s0 = spop %303 }
 0x36c   :  { %v243_v30 = vstv %s304_s0 }
 0x36d   :  { %v244_v31 = vadd.f32 %v243_v30, %v227_v29 }
 0x36f   :  { %246 = vst.msk [vmem:[#allocation6] sm:$0x1] %vm47_vm5, %v244_v31  ;;  %s306_s26 = spop %305 }
 0x370   :  { %v266_v33 = vstv %s306_s26 }
 0x376   :  { %v250_v32 = vld [vmem:[#allocation6] sm:$0x1] }
 0x377   :  { %v267_v34 = vadd.f32 %v266_v33, %v250_v32 }
 0x379   :  { %269 = vst.msk [vmem:[#allocation6] sm:$0x1] %vm47_vm5, %v267_v34 }
 0x380   :  { %v272_v35 = vld [vmem:[#allocation6] sm:$0x1] }
 0x381   :  { %v273_v36 = vmul.f32 0.0625, %v272_v35 }
 0x383   :  { %275 = vst.msk [vmem:[#allocation13] sm:$0x1] %vm47_vm5, %v273_v36 }
 0x384   :  { %378 = shalt.err (!%p375_p0)
}
 0x385   :  { %285 = dma.vmem_to_hbm [thread:$0]  %s283_s28, 16, %s468_s3, [#allocation10]  }
 0x386   :  { %391 = dma.done.wait [#allocation10], 16  }
 0x387   :  { %392 = vsyncadd [#allocation10], 4294967280 }
 0x388   :  { %289 = vsyncpa [#allocation9], 1 }
 0x389   :  { %290 = vsyncpa [#allocation12], 1 }
 0x38a   :  { %291 = vsyncpa [#allocation10], 1 }

</bundles_post_ra>
